<compile_context>
chip_gen: v5e
topology: v5e:2x2
jax: 0.10.0
libtpu: 0.0.40
codegen_flags: <defaults>
</compile_context>

<pallas_src>
import functools

import jax
import jax.numpy as jnp
from jax.experimental import pallas as pl
from jax.experimental.pallas import tpu as pltpu

IN_FEATURES = 512
HIDDEN = 12
OUT_FEATURES = 100
OUT_PAD = 128               # lane-dense padded output width (cols 100..127 == 0)
DEFAULT_BATCH_TILE = 2048   # ~10 MiB double-buffered: safe on every generation
MAX_BATCH_TILE = 4096       # hard cap (~20 MiB) under the explicit 32 MiB limit


def _round_up(n, m):
    return (n + m - 1) // m * m


def dressed_quantum_kernel(x_ref, w1_ref, b1_ref, w2_ref, b2_ref, o_ref):
    # pre_net: (tb, 512) @ (512, 12) + (1, 12)
    pre = jnp.dot(x_ref[...], w1_ref[...],
                  preferred_element_type=jnp.float32) + b1_ref[...]
    # "quantum" surrogate: tanh; the *pi/2 scale is folded into w2 (prepare_params).
    q = jnp.tanh(pre)
    # post_net: (tb, 12) @ (12, 128) + (1, 128)   (cols 100..127 are exact zeros)
    out = jnp.dot(q, w2_ref[...],
                  preferred_element_type=jnp.float32) + b2_ref[...]
    o_ref[...] = out.astype(o_ref.dtype)


def prepare_params(w_pre, b_pre, w_post, b_post):
    """One-time parameter prep (hoisted out of the per-call path).

    Returns kernel-layout params:
      w1t: (512, 12)  b1: (1, 12)  w2t: (12, 128) [pi/2 folded in]  b2: (1, 128)
    """
    w1t = jnp.transpose(w_pre).astype(jnp.float32)                      # (512, 12)
    b1 = b_pre.reshape(1, HIDDEN).astype(jnp.float32)                   # (1, 12)
    w2t = (jnp.transpose(w_post) * (jnp.pi / 2.0)).astype(jnp.float32)  # (12, 100)
    w2t = jnp.pad(w2t, ((0, 0), (0, OUT_PAD - OUT_FEATURES)))           # (12, 128)
    b2 = b_post.reshape(1, OUT_FEATURES).astype(jnp.float32)
    b2 = jnp.pad(b2, ((0, 0), (0, OUT_PAD - OUT_FEATURES)))             # (1, 128)
    return w1t, b1, w2t, b2


def _choose_batch_tile(batch, max_tile):
    """Batch tile: multiple of 8, <= VMEM-safe cap, and >= 2 (even) grid steps
    when possible so both v7x TensorCores get balanced work (harmless on
    single-TC v5e/v6e)."""
    max_tile = max(8, (min(max_tile, MAX_BATCH_TILE) // 8) * 8)
    nsteps = max(2, pl.cdiv(batch, max_tile))
    if nsteps % 2:
        nsteps += 1                      # even step count -> balanced TC split
    return max(8, _round_up(pl.cdiv(batch, nsteps), 8))


@functools.partial(jax.jit, static_argnames=("batch_tile", "trim_output"))
def dressed_quantum_net(x, w1t, b1, w2t, b2, *,
                        batch_tile=DEFAULT_BATCH_TILE, trim_output=False):
    """x: (B, 512) f32; params already in kernel layout (see prepare_params).

    Returns (B, 128) with cols 100..127 == 0 by default (no extra copy);
    trim_output=True returns the strict (B, 100) result.
    """
    batch = x.shape[0]
    tb = _choose_batch_tile(batch, batch_tile)
    grid = (pl.cdiv(batch, tb),)   # ragged last block: no jnp.pad of x

    cost = pl.CostEstimate(
        flops=2 * batch * (IN_FEATURES * HIDDEN + HIDDEN * OUT_PAD),
        transcendentals=batch * HIDDEN,
        bytes_accessed=(batch * IN_FEATURES * 4          # stream x
                        + batch * OUT_PAD * 4            # stream out
                        + (IN_FEATURES * HIDDEN + HIDDEN
                           + HIDDEN * OUT_PAD + OUT_PAD) * 4),  # params once
    )

    out = pl.pallas_call(
        dressed_quantum_kernel,
        out_shape=jax.ShapeDtypeStruct((batch, OUT_PAD), jnp.float32),
        grid=grid,
        in_specs=[
            # x streams over the batch grid axis (double-buffered by Pallas).
            pl.BlockSpec((tb, IN_FEATURES), lambda i: (i, 0)),
            # Weights / biases: full-extent blocks, resident across all steps.
            pl.BlockSpec((IN_FEATURES, HIDDEN), lambda i: (0, 0)),
            pl.BlockSpec((1, HIDDEN), lambda i: (0, 0)),
            pl.BlockSpec((HIDDEN, OUT_PAD), lambda i: (0, 0)),
            pl.BlockSpec((1, OUT_PAD), lambda i: (0, 0)),
        ],
        out_specs=pl.BlockSpec((tb, OUT_PAD), lambda i: (i, 0)),
        compiler_params=pltpu.CompilerParams(
            dimension_semantics=("parallel",),
            vmem_limit_bytes=32 * 1024 * 1024),
        cost_estimate=cost,
    )(x, w1t, b1, w2t, b2)

    if trim_output:
        return out[:, :OUT_FEATURES]
    return out


def init_params(key):
    """Deterministic synthetic parameters matching the nn.Module shapes."""
    k1, k2, k3, k4, k5 = jax.random.split(key, 5)
    # nn.Linear default init: U(-1/sqrt(fan_in), 1/sqrt(fan_in))
    bound1 = 1.0 / jnp.sqrt(IN_FEATURES)
    w_pre = jax.random.uniform(k1, (HIDDEN, IN_FEATURES), jnp.float32,
                               -bound1, bound1)
    b_pre = jax.random.uniform(k2, (HIDDEN,), jnp.float32, -bound1, bound1)
    bound2 = 1.0 / jnp.sqrt(HIDDEN)
    w_post = jax.random.uniform(k3, (OUT_FEATURES, HIDDEN), jnp.float32,
                                -bound2, bound2)
    b_post = jax.random.uniform(k4, (OUT_FEATURES,), jnp.float32,
                                -bound2, bound2)
    # q_params exist in the module but are unused in forward().
    q_params = jax.random.normal(k5, (10 * HIDDEN,), jnp.float32) * 0.01
    return w_pre, b_pre, w_post, b_post, q_params


def reference(x, w_pre, b_pre, w_post, b_post):
    hi = jax.lax.Precision.HIGHEST
    pre = jnp.dot(x, w_pre.T, precision=hi) + b_pre
    q = jnp.tanh(pre) * (jnp.pi / 2.0)
    return jnp.dot(q, w_post.T, precision=hi) + b_post


if __name__ == "__main__":
    key = jax.random.PRNGKey(0)
    kx, kx2, kp = jax.random.split(key, 3)
    w_pre, b_pre, w_post, b_post, _q_params = init_params(kp)

    # One-time parameter preparation (not in the per-call path).
    w1t, b1, w2t, b2 = jax.block_until_ready(
        prepare_params(w_pre, b_pre, w_post, b_post))

    # Case 1: sublane-aligned batch, padded (B, 128) output (default path).
    B = 8
    x = jax.random.normal(kx, (B, IN_FEATURES), jnp.float32)
    out = jax.block_until_ready(dressed_quantum_net(x, w1t, b1, w2t, b2))
    ref = reference(x, w_pre, b_pre, w_post, b_post)
    assert out.shape == (B, OUT_PAD)
    assert jnp.allclose(out[:, :OUT_FEATURES], ref, atol=1e-3, rtol=1e-3)
    assert bool(jnp.all(out[:, OUT_FEATURES:] == 0.0))

    # Case 2: ragged batch (not a multiple of the 8-row tile) exercises the
    # no-pad ragged-last-block path; strict (B, 100) output requested.
    B2 = 13
    x2 = jax.random.normal(kx2, (B2, IN_FEATURES), jnp.float32)
    out2 = jax.block_until_ready(
        dressed_quantum_net(x2, w1t, b1, w2t, b2, trim_output=True))
    ref2 = reference(x2, w_pre, b_pre, w_post, b_post)
    assert out2.shape == (B2, OUT_FEATURES)
    assert jnp.allclose(out2, ref2, atol=1e-3, rtol=1e-3)

    print("KERNEL_OK")
</pallas_src>

<mosaic_0001>
module attributes {stable_mosaic.version = 11 : i64} {
  func.func @dressed_quantum_kernel(%arg0: i32, %arg1: memref<8x512xf32, #tpu.memory_space<vmem>>, %arg2: memref<512x12xf32, #tpu.memory_space<vmem>>, %arg3: memref<1x12xf32, #tpu.memory_space<vmem>>, %arg4: memref<12x128xf32, #tpu.memory_space<vmem>>, %arg5: memref<1x128xf32, #tpu.memory_space<vmem>>, %arg6: memref<8x128xf32, #tpu.memory_space<vmem>>) attributes {dimension_semantics = [#tpu.dimension_semantics<parallel>], iteration_bounds = array<i64: 1>, scalar_prefetch = 0 : i64, scratch_operands = 0 : i64, tpu.core_type = #tpu.core_type<tc>, window_params = [{transform_indices = @transform_0, window_bounds = array<i64: 8, 512>}, {pipeline_mode = #tpu.pipeline_mode<synchronous>, transform_indices = @transform_1, window_bounds = array<i64: 512, 12>}, {pipeline_mode = #tpu.pipeline_mode<synchronous>, transform_indices = @transform_2, window_bounds = array<i64: 1, 12>}, {pipeline_mode = #tpu.pipeline_mode<synchronous>, transform_indices = @transform_3, window_bounds = array<i64: 12, 128>}, {pipeline_mode = #tpu.pipeline_mode<synchronous>, transform_indices = @transform_4, window_bounds = array<i64: 1, 128>}, {transform_indices = @transform_5, window_bounds = array<i64: 8, 128>}]} {
    %c0 = arith.constant 0 : index
    %c0_0 = arith.constant 0 : index
    %0 = vector.load %arg1[%c0, %c0_0] : memref<8x512xf32, #tpu.memory_space<vmem>>, vector<8x512xf32>
    %c0_1 = arith.constant 0 : index
    %c0_2 = arith.constant 0 : index
    %1 = vector.load %arg2[%c0_1, %c0_2] : memref<512x12xf32, #tpu.memory_space<vmem>>, vector<512x12xf32>
    %cst = arith.constant dense<0.000000e+00> : vector<8x12xf32>
    %2 = tpu.matmul %0, %1, %cst {dimension_numbers = #tpu.dot_dimension_numbers<[1], [0], [0], [1], [0, 0, 1, 1], [], []>} : vector<8x512xf32>, vector<512x12xf32>, vector<8x12xf32> -> vector<8x12xf32>
    %c0_3 = arith.constant 0 : index
    %c0_4 = arith.constant 0 : index
    %3 = vector.load %arg3[%c0_3, %c0_4] : memref<1x12xf32, #tpu.memory_space<vmem>>, vector<1x12xf32>
    %4 = vector.broadcast %3 : vector<1x12xf32> to vector<8x12xf32>
    %5 = arith.addf %2, %4 : vector<8x12xf32>
    %6 = math.tanh %5 : vector<8x12xf32>
    %c0_5 = arith.constant 0 : index
    %c0_6 = arith.constant 0 : index
    %7 = vector.load %arg4[%c0_5, %c0_6] : memref<12x128xf32, #tpu.memory_space<vmem>>, vector<12x128xf32>
    %cst_7 = arith.constant dense<0.000000e+00> : vector<8x128xf32>
    %8 = tpu.matmul %6, %7, %cst_7 {dimension_numbers = #tpu.dot_dimension_numbers<[1], [0], [0], [1], [0, 0, 1, 1], [], []>} : vector<8x12xf32>, vector<12x128xf32>, vector<8x128xf32> -> vector<8x128xf32>
    %c0_8 = arith.constant 0 : index
    %c0_9 = arith.constant 0 : index
    %9 = vector.load %arg5[%c0_8, %c0_9] : memref<1x128xf32, #tpu.memory_space<vmem>>, vector<1x128xf32>
    %10 = vector.broadcast %9 : vector<1x128xf32> to vector<8x128xf32>
    %11 = arith.addf %8, %10 : vector<8x128xf32>
    %c0_10 = arith.constant 0 : index
    %c0_11 = arith.constant 0 : index
    %12 = vector.load %arg6[%c0_10, %c0_11] : memref<8x128xf32, #tpu.memory_space<vmem>>, vector<8x128xf32>
    tpu.vector_store %arg6[%c0_10, %c0_11], %11 {strides = array<i32>} : memref<8x128xf32, #tpu.memory_space<vmem>>, vector<8x128xf32>,
    return
  }
  func.func @transform_0(%arg0: i32) -> (i32, i32) {
    %c0_i32 = arith.constant 0 : i32
    %c0_i32_0 = arith.constant 0 : i32
    return %arg0, %c0_i32 : i32, i32
  }
  func.func @transform_1(%arg0: i32) -> (i32, i32) {
    %c0_i32 = arith.constant 0 : i32
    %c0_i32_0 = arith.constant 0 : i32
    %c0_i32_1 = arith.constant 0 : i32
    return %c0_i32, %c0_i32_0 : i32, i32
  }
  func.func @transform_2(%arg0: i32) -> (i32, i32) {
    %c0_i32 = arith.constant 0 : i32
    %c0_i32_0 = arith.constant 0 : i32
    %c0_i32_1 = arith.constant 0 : i32
    return %c0_i32, %c0_i32_0 : i32, i32
  }
  func.func @transform_3(%arg0: i32) -> (i32, i32) {
    %c0_i32 = arith.constant 0 : i32
    %c0_i32_0 = arith.constant 0 : i32
    %c0_i32_1 = arith.constant 0 : i32
    return %c0_i32, %c0_i32_0 : i32, i32
  }
  func.func @transform_4(%arg0: i32) -> (i32, i32) {
    %c0_i32 = arith.constant 0 : i32
    %c0_i32_0 = arith.constant 0 : i32
    %c0_i32_1 = arith.constant 0 : i32
    return %c0_i32, %c0_i32_0 : i32, i32
  }
  func.func @transform_5(%arg0: i32) -> (i32, i32) {
    %c0_i32 = arith.constant 0 : i32
    %c0_i32_0 = arith.constant 0 : i32
    return %arg0, %c0_i32 : i32, i32
  }
}

</mosaic_0001>

<bundles_post_ra>
// kernel: dressed_quantum_net.1
= control target key start
LH: loop header
LB: loop body
LE: loop exit
PB: predicated region body
PF: predicated region fallthrough
CT: control target
= control target key end

     0   :  { %s508_s0 = inlined_call_operand.vmem [shape: f32[8,512], index: 0, kind: input, shape index: {}]   ;;  %s509_s1 = inlined_call_operand.vmem [shape: f32[512,12], index: 1, kind: input, shape index: {}]   ;;  %s510_s2 = inlined_call_operand.vmem [shape: f32[1,12], index: 2, kind: input, shape index: {}]   ;;  %s511_s3 = inlined_call_operand.vmem [shape: f32[12,128], index: 3, kind: input, shape index: {}]   ;;  %s512_s4 = inlined_call_operand.vmem [shape: f32[1,128], index: 4, kind: input, shape index: {}]   ;;  %s513_s5 = inlined_call_operand.hbm [shape: f32[8,128], index: 5, kind: output, shape index: {}]  }
   0x1   :  { %v72_v0 = vld [vmem:[%s509_s1 + $0x178] sm:$0xff]  ;;  %v71_v2 = vld [vmem:[%s509_s1 + $0x170] sm:$0xff]  ;;  %v70_v6 = vld [vmem:[%s509_s1 + $0x168] sm:$0xff] }
   0x2   :  { %v40_v1 = vld [vmem:[%s509_s1 + $0x78] sm:$0xff]  ;;  %133 = vmatpush.msra.mxu2 %v72_v0  ;;  %v39_v4 = vld [vmem:[%s509_s1 + $0x70] sm:$0xff]  ;;  %v38_v8 = vld [vmem:[%s509_s1 + $0x68] sm:$0xff] }
   0x3   :  { %93 = vmatpush.msra.mxu0 %v40_v1  ;;  %v88_v3 = vld [vmem:[%s509_s1 + $0x1f8] sm:$0xff]  ;;  %v87_v7 = vld [vmem:[%s509_s1 + $0x1f0] sm:$0xff]  ;;  %v86_v10 = vld [vmem:[%s509_s1 + $0x1e8] sm:$0xff] }
   0x4   :  { %v56_v5 = vld [vmem:[%s509_s1 + $0xf8] sm:$0xff]  ;;  %153 = vmatpush.msra.mxu3 %v88_v3  ;;  %134 = vmatpush.msra.mxu2 %v71_v2  ;;  %v55_v9 = vld [vmem:[%s509_s1 + $0xf0] sm:$0xff]  ;;  %v69_v11 = vld [vmem:[%s509_s1 + $0x160] sm:$0xff] }
   0x5   :  { %113 = vmatpush.msra.mxu1 %v56_v5  ;;  %94 = vmatpush.msra.mxu0 %v39_v4  ;;  %v37_v12 = vld [vmem:[%s509_s1 + $0x60] sm:$0xff]  ;;  %v54_v13 = vld [vmem:[%s509_s1 + $0xe8] sm:$0xff]  ;;  %v68_v16 = vld [vmem:[%s509_s1 + $0x158] sm:$0xff] }
   0x6   :  { %154 = vmatpush.msra.mxu3 %v87_v7  ;;  %135 = vmatpush.msra.mxu2 %v70_v6  ;;  %v85_v14 = vld [vmem:[%s509_s1 + $0x1e0] sm:$0xff]  ;;  %v36_v17 = vld [vmem:[%s509_s1 + $0x58] sm:$0xff]  ;;  %v67_v20 = vld [vmem:[%s509_s1 + $0x150] sm:$0xff] }
   0x7   :  { %114 = vmatpush.msra.mxu1 %v55_v9  ;;  %95 = vmatpush.msra.mxu0 %v38_v8  ;;  %v53_v15 = vld [vmem:[%s509_s1 + $0xe0] sm:$0xff]  ;;  %v84_v18 = vld [vmem:[%s509_s1 + $0x1d8] sm:$0xff]  ;;  %v35_v21 = vld [vmem:[%s509_s1 + $0x50] sm:$0xff] }
   0x8   :  { %155 = vmatpush.msra.mxu3 %v86_v10  ;;  %136 = vmatpush.msra.mxu2 %v69_v11  ;;  %v52_v19 = vld [vmem:[%s509_s1 + $0xd8] sm:$0xff]  ;;  %v83_v22 = vld [vmem:[%s509_s1 + $0x1d0] sm:$0xff]  ;;  %v66_v24 = vld [vmem:[%s509_s1 + $0x148] sm:$0xff] }
   0x9   :  { %115 = vmatpush.msra.mxu1 %v54_v13  ;;  %96 = vmatpush.msra.mxu0 %v37_v12  ;;  %v51_v23 = vld [vmem:[%s509_s1 + $0xd0] sm:$0xff]  ;;  %v34_v25 = vld [vmem:[%s509_s1 + $0x48] sm:$0xff]  ;;  %v65_v28 = vld [vmem:[%s509_s1 + $0x140] sm:$0xff] }
   0xa   :  { %156 = vmatpush.msra.mxu3 %v85_v14  ;;  %137 = vmatpush.msra.mxu2 %v68_v16  ;;  %v82_v26 = vld [vmem:[%s509_s1 + $0x1c8] sm:$0xff]  ;;  %v33_v29 = vld [vmem:[%s509_s1 + $0x40] sm:$0xff]  ;;  %v64_v32 = vld [vmem:[%s509_s1 + $0x138] sm:$0xff] }
   0xb   :  { %116 = vmatpush.msra.mxu1 %v53_v15  ;;  %97 = vmatpush.msra.mxu0 %v36_v17  ;;  %v50_v27 = vld [vmem:[%s509_s1 + $0xc8] sm:$0xff]  ;;  %v81_v30 = vld [vmem:[%s509_s1 + $0x1c0] sm:$0xff]  ;;  %v32_v33 = vld [vmem:[%s509_s1 + $0x38] sm:$0xff] }
   0xc   :  { %157 = vmatpush.msra.mxu3 %v84_v18  ;;  %138 = vmatpush.msra.mxu2 %v67_v20  ;;  %v49_v31 = vld [vmem:[%s509_s1 + $0xc0] sm:$0xff]  ;;  %v80_v34 = vld [vmem:[%s509_s1 + $0x1b8] sm:$0xff]  ;;  %v63_v36 = vld [vmem:[%s509_s1 + $0x130] sm:$0xff] }
   0xd   :  { %117 = vmatpush.msra.mxu1 %v52_v19  ;;  %98 = vmatpush.msra.mxu0 %v35_v21  ;;  %v48_v35 = vld [vmem:[%s509_s1 + $0xb8] sm:$0xff]  ;;  %v31_v37 = vld [vmem:[%s509_s1 + $0x30] sm:$0xff]  ;;  %v62_v40 = vld [vmem:[%s509_s1 + $0x128] sm:$0xff] }
   0xe   :  { %158 = vmatpush.msra.mxu3 %v83_v22  ;;  %139 = vmatpush.msra.mxu2 %v66_v24  ;;  %v79_v38 = vld [vmem:[%s509_s1 + $0x1b0] sm:$0xff]  ;;  %v30_v41 = vld [vmem:[%s509_s1 + $0x28] sm:$0xff]  ;;  %v61_v44 = vld [vmem:[%s509_s1 + $0x120] sm:$0xff] }
   0xf   :  { %118 = vmatpush.msra.mxu1 %v51_v23  ;;  %99 = vmatpush.msra.mxu0 %v34_v25  ;;  %v47_v39 = vld [vmem:[%s509_s1 + $0xb0] sm:$0xff]  ;;  %v78_v42 = vld [vmem:[%s509_s1 + $0x1a8] sm:$0xff]  ;;  %v29_v45 = vld [vmem:[%s509_s1 + $0x20] sm:$0xff] }
  0x10   :  { %159 = vmatpush.msra.mxu3 %v82_v26  ;;  %140 = vmatpush.msra.mxu2 %v65_v28  ;;  %v46_v43 = vld [vmem:[%s509_s1 + $0xa8] sm:$0xff]  ;;  %v60_v46 = vld [vmem:[%s509_s1 + $0x118] sm:$0xff]  ;;  %v77_v47 = vld [vmem:[%s509_s1 + $0x1a0] sm:$0xff] }
  0x11   :  { %119 = vmatpush.msra.mxu1 %v50_v27  ;;  %100 = vmatpush.msra.mxu0 %v33_v29  ;;  %v45_v48 = vld [vmem:[%s509_s1 + $0xa0] sm:$0xff]  ;;  %v28_v49 = vld [vmem:[%s509_s1 + $0x18] sm:$0xff] }
  0x12   :  { %160 = vmatpush.msra.mxu3 %v81_v30  ;;  %141 = vmatpush.msra.mxu2 %v64_v32  ;;  %v76_v50 = vld [vmem:[%s509_s1 + $0x198] sm:$0xff] }
  0x13   :  { %120 = vmatpush.msra.mxu1 %v49_v31  ;;  %101 = vmatpush.msra.mxu0 %v32_v33  ;;  %v44_v51 = vld [vmem:[%s509_s1 + $0x98] sm:$0xff] }
  0x14   :  { %161 = vmatpush.msra.mxu3 %v80_v34  ;;  %142 = vmatpush.msra.mxu2 %v63_v36 }
  0x15   :  { %121 = vmatpush.msra.mxu1 %v48_v35  ;;  %102 = vmatpush.msra.mxu0 %v31_v37 }
  0x16   :  { %162 = vmatpush.msra.mxu3 %v79_v38  ;;  %143 = vmatpush.msra.mxu2 %v62_v40 }
  0x17   :  { %122 = vmatpush.msra.mxu1 %v47_v39  ;;  %103 = vmatpush.msra.mxu0 %v30_v41 }
  0x18   :  { %163 = vmatpush.msra.mxu3 %v78_v42  ;;  %144 = vmatpush.msra.mxu2 %v61_v44 }
  0x19   :  { %123 = vmatpush.msra.mxu1 %v46_v43  ;;  %104 = vmatpush.msra.mxu0 %v29_v45 }
  0x1a   :  { %10 = vsyncpa [#allocation3], 0  ;;  %164 = vmatpush.msra.mxu3 %v77_v47  ;;  %v59_v52 = vld [vmem:[%s509_s1 + $0x110] sm:$0xff]  ;;  %145 = vmatpush.msra.mxu2 %v60_v46  ;;  %v58_v56 = vld [vmem:[%s509_s1 + $0x108] sm:$0xff]  ;;  %vm184_vm0 = vcmask 1043456   ;;  %vm180_vm1 = vcmask 97280  }
  0x1b   :  { %124 = vmatpush.msra.mxu1 %v45_v48  ;;  %v27_v53 = vld [vmem:[%s509_s1 + $0x10] sm:$0xff]  ;;  %105 = vmatpush.msra.mxu0 %v28_v49  ;;  %v26_v57 = vld [vmem:[%s509_s1 + $0x8] sm:$0xff]  ;;  %v57_v60 = vld [vmem:[%s509_s1 + $0x100] sm:$0xff]  ;;  %s258_s9 = smov [#allocation2]   ;;  %s216_s12 = sshll.u32 %s513_s5, 4  ;;  %s217_s12 = int_to_ptr.hbm [resolvable:$true] %s216_s12 }
  0x1c   :  { %v75_v54 = vld [vmem:[%s509_s1 + $0x190] sm:$0xff]  ;;  %165 = vmatpush.msra.mxu3 %v76_v50  ;;  %146 = vmatpush.msra.mxu2 %v59_v52  ;;  %v74_v58 = vld [vmem:[%s509_s1 + $0x188] sm:$0xff]  ;;  %v25_v61 = vld [vmem:[%s509_s1] sm:$0xff]  ;;  %s214_s10 = sshll.u32 %s258_s9, 4  ;;  %s215_s10 = int_to_ptr.vmem [resolvable:$true] %s214_s10 }
  0x1d   :  { %v43_v55 = vld [vmem:[%s509_s1 + $0x90] sm:$0xff]  ;;  %125 = vmatpush.msra.mxu1 %v44_v51  ;;  %106 = vmatpush.msra.mxu0 %v27_v53  ;;  %v42_v59 = vld [vmem:[%s509_s1 + $0x88] sm:$0xff]  ;;  %v73_v63 = vld [vmem:[%s509_s1 + $0x180] sm:$0xff] }
  0x1e   :  { %166 = vmatpush.msra.mxu3 %v75_v54  ;;  %147 = vmatpush.msra.mxu2 %v58_v56  ;;  %v23_v62 = vld [vmem:[%s508_s0 + $0x10] sm:$0xff]  ;;  %v21_v0 = vld [vmem:[%s508_s0] sm:$0xff]  ;;  %v24_v1 = vld [vmem:[%s508_s0 + $0x18] sm:$0xff] }
  0x1f   :  { %126 = vmatpush.msra.mxu1 %v43_v55  ;;  %107 = vmatpush.msra.mxu0 %v26_v57  ;;  %v41_v2 = vld [vmem:[%s509_s1 + $0x80] sm:$0xff]  ;;  %v22_v3 = vld [vmem:[%s508_s0 + $0x8] sm:$0xff] }
  0x20   :  { %167 = vmatpush.msra.mxu3 %v74_v58  ;;  %148 = vmatpush.msra.mxu2 %v57_v60  ;;  %v175_v4 = vld [vmem:[%s511_s3 + $0x8] sm:$0xf]  ;;  %v174_v5 = vld [vmem:[%s511_s3] sm:$0xff] }
  0x21   :  { %127 = vmatpush.msra.mxu1 %v42_v59  ;;  %108 = vmatpush.msra.mxu0 %v25_v61  ;;  %v228_v6 = vld [vmem:[%s510_s2] ss:$0 sm:$0xff] }
  0x22   :  { %149 = vmatmul.f32.vlgmr.msra.gmra.mxu2 %v23_v62  ;;  %168 = vmatpush.msra.mxu3 %v73_v63  ;;  %v229_v16 = vld [vmem:[%s512_s4] ss:$0 sm:$0xff] }
  0x23   :  { %109 = vmatmul.f32.vlgmr.msra.gmra.mxu0 %v21_v0  ;;  %169 = vmatmul.f32.vlgmr.msra.gmra.mxu3 %v24_v1 }
  0x24   :  { %128 = vmatpush.msra.mxu1 %v41_v2  ;;  %225 = vmatpush.msk.msrb.mxu0 %vm184_vm0, %v175_v4 }
  0x25   :  { %129 = vmatmul.f32.vlgmr.msra.gmra.mxu1 %v22_v3 }
  0x26   :  { %203 = vmatpush.msrb.mxu0 %v174_v5 }
  0xa0   :  { %v110_v7 = vpop.f32.mrf.mxu0 }
  0xa1   :  { %v111_v8 = vadd.f32 %v228_v6, %v110_v7 }
  0xa2   :  { %v130_v9 = vpop.f32.mrf.mxu1 }
  0xa3   :  { %v131_v10 = vadd.f32 %v130_v9, %v111_v8 }
  0xa5   :  { %v150_v11 = vpop.f32.mrf.mxu2 }
  0xa6   :  { %v151_v12 = vadd.f32 %v150_v11, %v131_v10  ;;  %v170_v13 = vpop.f32.mrf.mxu3 }
  0xa8   :  { %v171_v14 = vadd.f32 %v170_v13, %v151_v12 }
  0xaa   :  { %230 = vtanh.f32 %v171_v14 }
  0xb0   :  { %v231_v15 = vpop.eup %230 }
  0xb1   :  { %226 = vmatmul.msk.f32.vlgmr.msrb.gmra.mxu0 %vm180_vm1, %v231_v15 }
 0x12e   :  { %v205_v17 = vpop.f32.mrf.mxu0 }
 0x12f   :  { %v206_v18 = vadd.f32 %v229_v16, %v205_v17 }
 0x131   :  { %208 = vst [vmem:[#allocation2] sm:$0xff] %v206_v18 }
 0x132   :  { %219 = dma.vmem_to_hbm [thread:$0]  %s215_s10, 128, %s217_s12, [#allocation3]  }
 0x133   :  { %256 = dma.done.wait [#allocation3], 128  }
 0x134   :  { %257 = vsyncadd [#allocation3], 4294967168 }
 0x135   :  { %224 = vsyncpa [#allocation3], 1 }

</bundles_post_ra>
